<compile_context>
chip_gen: v7x
topology: tpu7x:2x2x1
jax: 0.10.0
libtpu: 0.0.40
codegen_flags: <defaults>
</compile_context>

<pallas_src>
import jax
import jax.numpy as jnp
import numpy as np
from jax.experimental import pallas as pl
from jax.experimental.pallas import tpu as pltpu


def _round_up(x, m):
    return ((x + m - 1) // m) * m


def _block_diag(w):
    """(A, k, n) -> (A*k, A*n) block-diagonal. One-time packing, trace-time loop."""
    A, k, n = w.shape
    out = jnp.zeros((A * k, A * n), w.dtype)
    for a in range(A):
        out = out.at[a * k:(a + 1) * k, a * n:(a + 1) * n].set(w[a])
    return out


def pack_params(params):
    """One-time packing of the role-selected per-agent weights (mirrors the
    PyTorch init_latent gather — NOT on the per-step hot path).

    Layout (HP = round_up(A*H, 128), G = 2*HP, QP = round_up(A*n_actions, 128)):
      w1  : (A*I, HP)  bf16   fc1 block-diag, cols zero-padded to HP
      wri : (G, G)     bf16   rows [0:AH]=x1 part, [HP:HP+AH]=h part;
                              cols [0:AH]=r gate, [HP:HP+AH]=i gate
      wn  : (G, G)     bf16   [[Wxn, 0], [0, Whn]] in the same row/col layout
      w2  : (HP, QP)   bf16   fc2 block-diag
      b   : (8, G)     f32    row0=b1, row1=br|bi, row2=bxn|bhn, row3=b2
    """
    fc1_w = params["fc1_w"]                                   # (A, I, H)
    A, I, H = (int(d) for d in fc1_w.shape)
    n_actions = int(params["fc2_w"].shape[-1])
    AI, AH, AQ = A * I, A * H, A * n_actions
    HP = _round_up(AH, 128)
    QP = _round_up(AQ, 128)
    G = 2 * HP

    ihw, hhw = params["rnn_ih_w"], params["rnn_hh_w"]         # (A, H, 3H)
    ihb = params["rnn_ih_b"][:, 0, :]                         # (A, 3H)
    hhb = params["rnn_hh_b"][:, 0, :]
    bd = _block_diag

    # fc1 (padded-lane output so x1 is 128-lane dense; pad lanes = relu(0) = 0)
    W1 = jnp.zeros((AI, HP), jnp.float32).at[:, :AH].set(bd(fc1_w))

    # fused r|i gate weights (aligned concat: h rows start at HP)
    Wri = jnp.zeros((G, G), jnp.float32)
    Wri = Wri.at[0:AH,      0:AH     ].set(bd(ihw[:, :, 0 * H:1 * H]))   # x1 -> r
    Wri = Wri.at[HP:HP + AH, 0:AH    ].set(bd(hhw[:, :, 0 * H:1 * H]))   # h  -> r
    Wri = Wri.at[0:AH,      HP:HP + AH].set(bd(ihw[:, :, 1 * H:2 * H]))  # x1 -> i
    Wri = Wri.at[HP:HP + AH, HP:HP + AH].set(bd(hhw[:, :, 1 * H:2 * H])) # h  -> i

    # fused xn|hn weights (biases kept separate: resetgate scales only hn)
    Wn = jnp.zeros((G, G), jnp.float32)
    Wn = Wn.at[0:AH,       0:AH      ].set(bd(ihw[:, :, 2 * H:3 * H]))   # x1 -> xn
    Wn = Wn.at[HP:HP + AH, HP:HP + AH].set(bd(hhw[:, :, 2 * H:3 * H]))   # h  -> hn

    # fc2 (q produced 128-lane dense; pad cols/bias zero -> pad q = relu(0) = 0)
    W2 = jnp.zeros((HP, QP), jnp.float32).at[:AH, :AQ].set(bd(params["fc2_w"]))

    b1 = params["fc1_b"][:, 0, :].reshape(AH)
    br = (ihb[:, 0 * H:1 * H] + hhb[:, 0 * H:1 * H]).reshape(AH)
    bi = (ihb[:, 1 * H:2 * H] + hhb[:, 1 * H:2 * H]).reshape(AH)
    bxn = ihb[:, 2 * H:3 * H].reshape(AH)
    bhn = hhb[:, 2 * H:3 * H].reshape(AH)
    b2 = params["fc2_b"][:, 0, :].reshape(AQ)

    b_pack = jnp.zeros((8, G), jnp.float32)
    b_pack = b_pack.at[0, :AH].set(b1)
    b_pack = b_pack.at[1, :AH].set(br)
    b_pack = b_pack.at[1, HP:HP + AH].set(bi)
    b_pack = b_pack.at[2, :AH].set(bxn)
    b_pack = b_pack.at[2, HP:HP + AH].set(bhn)
    b_pack = b_pack.at[3, :AQ].set(b2)

    weights = dict(w1=W1.astype(jnp.bfloat16), wri=Wri.astype(jnp.bfloat16),
                   wn=Wn.astype(jnp.bfloat16), w2=W2.astype(jnp.bfloat16),
                   b=b_pack)
    dims = dict(A=A, I=I, H=H, n_actions=n_actions,
                AI=AI, AH=AH, AQ=AQ, HP=HP, QP=QP, G=G)
    return weights, dims


def _make_cell(dims):
    """One GRU-agent-mixture step on padded 128-lane layouts (shared by both kernels)."""
    HP, QP = dims["HP"], dims["QP"]

    def cell(x, h, w1_ref, wri_ref, wn_ref, w2_ref, b_ref):
        # x: (bs, AI) f32     h: (bs, HP) f32 with pad lanes == 0
        xb = x.astype(jnp.bfloat16)

        # fc1 + relu at 128-lane width (pad lanes stay exactly 0).
        x1 = jnp.dot(xb, w1_ref[...], preferred_element_type=jnp.float32)
        x1 = jnp.maximum(x1 + b_ref[0:1, :HP], 0.0)                  # (bs, HP)

        # vreg-aligned concat: h starts at lane HP (=128).
        xh = jnp.concatenate([x1, h], axis=-1).astype(jnp.bfloat16)  # (bs, 2*HP)

        # fused r|i gates: one matmul, slice at lane offset HP (vreg boundary).
        ri = jnp.dot(xh, wri_ref[...], preferred_element_type=jnp.float32)
        ri = jax.nn.sigmoid(ri + b_ref[1:2, :])
        r, i = ri[:, :HP], ri[:, HP:]

        # fused xn|hn: one matmul; biases added per-half before combining.
        nh = jnp.dot(xh, wn_ref[...], preferred_element_type=jnp.float32) + b_ref[2:3, :]
        n = jnp.tanh(nh[:, :HP] + r * nh[:, HP:])
        h_new = n + i * (h - n)          # pad lanes: 0 + 0.5*(0-0) = 0 forever

        # fc2 + relu, 128-lane dense output (unmasked store).
        q = jnp.dot(h_new.astype(jnp.bfloat16), w2_ref[...],
                    preferred_element_type=jnp.float32)
        q = jnp.maximum(q + b_ref[3:4, :QP], 0.0)                    # (bs, QP)
        return q, h_new

    return cell


def build_forward(dims):
    """Single-step forward matching the PyTorch module API exactly."""
    A, H, n_actions = dims["A"], dims["H"], dims["n_actions"]
    AI, AH, AQ, HP, QP = dims["AI"], dims["AH"], dims["AQ"], dims["HP"], dims["QP"]
    cell = _make_cell(dims)

    def kernel(x_ref, h_ref, w1_ref, wri_ref, wn_ref, w2_ref, b_ref,
               q_ref, hout_ref):
        q, h_new = cell(x_ref[...], h_ref[...],
                        w1_ref, wri_ref, wn_ref, w2_ref, b_ref)
        q_ref[...] = q
        hout_ref[...] = h_new

    @jax.jit
    def forward(inputs, hidden_state, weights):
        bs = inputs.shape[0] // A
        # Contiguous reshapes only; h is carried in the padded 128-lane layout.
        x_flat = inputs.reshape(bs, AI)
        h_pad = jnp.pad(hidden_state.reshape(bs, AH).astype(jnp.float32),
                        ((0, 0), (0, HP - AH)))
        q_pad, h_out = pl.pallas_call(
            kernel,
            # Gridless single invocation: every operand is a whole-array VMEM
            # block (7 small input DMAs, 2 lane-dense output DMAs).
            out_shape=(jax.ShapeDtypeStruct((bs, QP), jnp.float32),
                       jax.ShapeDtypeStruct((bs, HP), jnp.float32)),
            # In-place hidden-state update (review item: alias padded h).
            input_output_aliases={1: 1},
        )(x_flat, h_pad, weights["w1"], weights["wri"],
          weights["wn"], weights["w2"], weights["b"])
        # Tiny slices + free reshapes back to the torch stack(dim=1).view order.
        q = q_pad[:, :AQ].reshape(bs * A, n_actions)
        h = h_out[:, :AH].reshape(bs * A, H)
        return q, h

    return forward


def build_rollout(dims):
    """T-step rollout in ONE pallas_call: weights DMA'd once and kept VMEM
    resident (constant index_maps), hidden state carried in VMEM scratch."""
    A, H, n_actions = dims["A"], dims["H"], dims["n_actions"]
    AI, AH, AQ, HP, QP, G = (dims["AI"], dims["AH"], dims["AQ"],
                             dims["HP"], dims["QP"], dims["G"])
    cell = _make_cell(dims)

    def kernel(x_ref, h0_ref, w1_ref, wri_ref, wn_ref, w2_ref, b_ref,
               q_ref, hout_ref, h_acc):
        t = pl.program_id(0)

        @pl.when(t == 0)
        def _():
            h_acc[...] = h0_ref[...]

        q, h_new = cell(x_ref[0], h_acc[...],
                        w1_ref, wri_ref, wn_ref, w2_ref, b_ref)
        q_ref[0] = q
        h_acc[...] = h_new
        hout_ref[...] = h_new       # resident output block, written back once

    @jax.jit
    def rollout(inputs_seq, hidden_state, weights):
        # inputs_seq: (T, bs*A, I)
        T = inputs_seq.shape[0]
        bs = inputs_seq.shape[1] // A
        x_seq = inputs_seq.reshape(T, bs, AI)
        h_pad = jnp.pad(hidden_state.reshape(bs, AH).astype(jnp.float32),
                        ((0, 0), (0, HP - AH)))
        q_pad, h_out = pl.pallas_call(
            kernel,
            grid_spec=pltpu.PrefetchScalarGridSpec(
                num_scalar_prefetch=0,
                grid=(T,),
                in_specs=[
                    pl.BlockSpec((1, bs, AI), lambda t: (t, 0, 0)),   # x[t]
                    pl.BlockSpec((bs, HP),    lambda t: (0, 0)),      # h0 (once)
                    pl.BlockSpec((AI, HP),    lambda t: (0, 0)),      # weights:
                    pl.BlockSpec((G, G),      lambda t: (0, 0)),      #   constant
                    pl.BlockSpec((G, G),      lambda t: (0, 0)),      #   in t ->
                    pl.BlockSpec((HP, QP),    lambda t: (0, 0)),      #   fetched
                    pl.BlockSpec((8, G),      lambda t: (0, 0)),      #   once
                ],
                out_specs=[
                    pl.BlockSpec((1, bs, QP), lambda t: (t, 0, 0)),   # q[t]
                    pl.BlockSpec((bs, HP),    lambda t: (0, 0)),      # final h
                ],
                scratch_shapes=[pltpu.VMEM((bs, HP), jnp.float32)],   # h carry
            ),
            out_shape=(jax.ShapeDtypeStruct((T, bs, QP), jnp.float32),
                       jax.ShapeDtypeStruct((bs, HP), jnp.float32)),
            compiler_params=pltpu.CompilerParams(
                # Sequential recurrence through h_acc -> "arbitrary".
                dimension_semantics=("arbitrary",)),
        )(x_seq, h_pad, weights["w1"], weights["wri"],
          weights["wn"], weights["w2"], weights["b"])
        q = q_pad[:, :, :AQ].reshape(T, bs * A, n_actions)
        h = h_out[:, :AH].reshape(bs * A, H)
        return q, h

    return rollout


# ----------------------------------------------------------------------------
# Plain-JAX glue: raw params, Gumbel role selection (init_latent), reference.
# ----------------------------------------------------------------------------
def make_raw_params(key, n_agents, latent_dim, input_shape, hidden_dim, n_actions):
    ks = jax.random.split(key, 9)
    return {
        "pi_param": jax.random.uniform(ks[0], (n_agents, latent_dim)),
        "_fc1_w": jax.random.normal(ks[1], (latent_dim, input_shape, hidden_dim)),
        "_fc1_b": jax.random.normal(ks[2], (latent_dim, 1, hidden_dim)),
        "_rnn_ih_w": jax.random.normal(ks[3], (latent_dim, hidden_dim, hidden_dim * 3)),
        "_rnn_ih_b": jax.random.normal(ks[4], (latent_dim, 1, hidden_dim * 3)),
        "_rnn_hh_w": jax.random.normal(ks[5], (latent_dim, hidden_dim, hidden_dim * 3)),
        "_rnn_hh_b": jax.random.normal(ks[6], (latent_dim, 1, hidden_dim * 3)),
        "_fc2_w": jax.random.normal(ks[7], (latent_dim, hidden_dim, n_actions)),
        "_fc2_b": jax.random.normal(ks[8], (latent_dim, 1, n_actions)),
    }


def init_latent(key, raw_params):
    """Gumbel-argmax role selection (the module's init_latent); one-time JAX glue."""
    pi = jax.nn.softmax(raw_params["pi_param"], axis=1)
    u = jax.random.uniform(key, pi.shape)
    g = -jnp.log(-jnp.log(u))
    c = jnp.argmax(g + jnp.log(pi), axis=1)                 # (n_agents,)
    names = ["fc1_w", "fc1_b", "rnn_ih_w", "rnn_ih_b",
             "rnn_hh_w", "rnn_hh_b", "fc2_w", "fc2_b"]
    return {n: raw_params["_" + n][c] for n in names}, pi


def _bf16_matmul(a, b):
    """Baseline matmul matching the kernel's numerics (and the usual TPU f32
    default): bf16 operands, f32 accumulation."""
    return jnp.dot(a.astype(jnp.bfloat16), b.astype(jnp.bfloat16),
                   preferred_element_type=jnp.float32)


def reference_forward(inputs, hidden_state, params, mm=jnp.matmul):
    """Pure-JAX reference mirroring the PyTorch forward loop exactly."""
    fc1_w = params["fc1_w"]
    n_agents, in_dim, H = fc1_w.shape
    n_actions = params["fc2_w"].shape[-1]
    x = inputs.reshape(-1, n_agents, in_dim)
    h_in = hidden_state.reshape(-1, n_agents, H)
    q_all, h_all = [], []
    for a in range(n_agents):
        xi, hi = x[:, a], h_in[:, a]
        x1 = jax.nn.relu(mm(xi, fc1_w[a]) + params["fc1_b"][a])
        gi = mm(x1, params["rnn_ih_w"][a]) + params["rnn_ih_b"][a]
        gh = mm(hi, params["rnn_hh_w"][a]) + params["rnn_hh_b"][a]
        i_r, i_i, i_n = jnp.split(gi, 3, axis=-1)
        h_r, h_i_, h_n = jnp.split(gh, 3, axis=-1)
        resetgate = jax.nn.sigmoid(i_r + h_r)
        inputgate = jax.nn.sigmoid(i_i + h_i_)
        newgate = jnp.tanh(i_n + resetgate * h_n)
        hh = newgate + inputgate * (hi - newgate)
        q = jax.nn.relu(mm(hh, params["fc2_w"][a]) + params["fc2_b"][a])
        q_all.append(q)
        h_all.append(hh)
    q = jnp.stack(q_all, axis=1).reshape(-1, n_actions)
    h = jnp.stack(h_all, axis=1).reshape(-1, H)
    return q, h


if __name__ == "__main__":
    # Small deterministic config.
    n_agents, latent_dim = 3, 4
    input_shape, hidden_dim, n_actions = 16, 32, 8
    bs, T = 2, 8

    key = jax.random.PRNGKey(0)
    k_params, k_latent, k_in, k_h, k_seq = jax.random.split(key, 5)

    raw = make_raw_params(k_params, n_agents, latent_dim,
                          input_shape, hidden_dim, n_actions)
    params, _pi = init_latent(k_latent, raw)

    # One-time packing (mirrors the PyTorch init_latent weight gather).
    weights, dims = pack_params(params)
    forward = build_forward(dims)
    rollout = build_rollout(dims)

    inputs = jax.random.normal(k_in, (bs * n_agents, input_shape), jnp.float32)
    hidden = jax.random.normal(k_h, (bs * n_agents, hidden_dim), jnp.float32)
    inputs_seq = jax.random.normal(k_seq, (T, bs * n_agents, input_shape), jnp.float32)

    # ---- single-step forward (module API) ----
    q, h = forward(inputs, hidden, weights)
    jax.block_until_ready((q, h))
    # Compare against a baseline with the same matmul operand precision (bf16
    # operands / f32 accumulation); tolerance absorbs residual f32 reassociation
    # across the fused / block-diagonal contractions and rare bf16 ulp flips.
    q_ref, h_ref = reference_forward(inputs, hidden, params, mm=_bf16_matmul)
    np.testing.assert_allclose(np.asarray(q), np.asarray(q_ref), rtol=1e-2, atol=1e-2)
    np.testing.assert_allclose(np.asarray(h), np.asarray(h_ref), rtol=1e-2, atol=1e-2)
    assert q.shape == (bs * n_agents, n_actions)
    assert h.shape == (bs * n_agents, hidden_dim)

    # ---- T-step rollout: weights fetched once, h carried in VMEM ----
    q_seq, h_T = rollout(inputs_seq, hidden, weights)
    jax.block_until_ready((q_seq, h_T))
    h_r = hidden
    q_list = []
    for t in range(T):
        q_t, h_r = reference_forward(inputs_seq[t], h_r, params, mm=_bf16_matmul)
        q_list.append(q_t)
    q_seq_ref = jnp.stack(q_list, axis=0)
    np.testing.assert_allclose(np.asarray(q_seq), np.asarray(q_seq_ref),
                               rtol=3e-2, atol=3e-2)
    np.testing.assert_allclose(np.asarray(h_T), np.asarray(h_r),
                               rtol=3e-2, atol=3e-2)
    assert q_seq.shape == (T, bs * n_agents, n_actions)
    assert h_T.shape == (bs * n_agents, hidden_dim)

    print("KERNEL_OK")
</pallas_src>

<mosaic_0001>
module attributes {stable_mosaic.version = 11 : i64} {
  func.func @kernel(%arg0: memref<2x48xf32, #tpu.memory_space<vmem>>, %arg1: memref<2x128xf32, #tpu.memory_space<vmem>>, %arg2: memref<48x128xbf16, #tpu.memory_space<vmem>>, %arg3: memref<256x256xbf16, #tpu.memory_space<vmem>>, %arg4: memref<256x256xbf16, #tpu.memory_space<vmem>>, %arg5: memref<128x128xbf16, #tpu.memory_space<vmem>>, %arg6: memref<8x256xf32, #tpu.memory_space<vmem>>, %arg7: memref<2x128xf32, #tpu.memory_space<vmem>>, %arg8: memref<2x128xf32, #tpu.memory_space<vmem>>) attributes {dimension_semantics = [], scalar_prefetch = 0 : i64, scratch_operands = 0 : i64, tpu.core_type = #tpu.core_type<tc>} {
    %c0 = arith.constant 0 : index
    %c0_0 = arith.constant 0 : index
    %0 = vector.load %arg0[%c0, %c0_0] : memref<2x48xf32, #tpu.memory_space<vmem>>, vector<2x48xf32>
    %c0_1 = arith.constant 0 : index
    %c0_2 = arith.constant 0 : index
    %1 = vector.load %arg1[%c0_1, %c0_2] : memref<2x128xf32, #tpu.memory_space<vmem>>, vector<2x128xf32>
    %2 = arith.truncf %0 : vector<2x48xf32> to vector<2x48xbf16>
    %c0_3 = arith.constant 0 : index
    %c0_4 = arith.constant 0 : index
    %3 = vector.load %arg2[%c0_3, %c0_4] : memref<48x128xbf16, #tpu.memory_space<vmem>>, vector<48x128xbf16>
    %cst = arith.constant dense<0.000000e+00> : vector<2x128xf32>
    %4 = tpu.matmul %2, %3, %cst {dimension_numbers = #tpu.dot_dimension_numbers<[1], [0], [0], [1], [0, 0, 1, 1], [], []>} : vector<2x48xbf16>, vector<48x128xbf16>, vector<2x128xf32> -> vector<2x128xf32>
    %c0_5 = arith.constant 0 : index
    %c0_6 = arith.constant 0 : index
    %5 = vector.load %arg6[%c0_5, %c0_6] : memref<8x256xf32, #tpu.memory_space<vmem>>, vector<1x128xf32>
    %6 = vector.broadcast %5 : vector<1x128xf32> to vector<2x128xf32>
    %7 = arith.addf %4, %6 : vector<2x128xf32>
    %cst_7 = arith.constant 0.000000e+00 : f32
    %8 = vector.broadcast %cst_7 : f32 to vector<2x128xf32>
    %9 = arith.maximumf %7, %8 : vector<2x128xf32>
    %10 = tpu.concatenate %9, %1 in 1 : vector<2x128xf32>, vector<2x128xf32> -> vector<2x256xf32>
    %11 = arith.truncf %10 : vector<2x256xf32> to vector<2x256xbf16>
    %c0_8 = arith.constant 0 : index
    %c0_9 = arith.constant 0 : index
    %12 = vector.load %arg3[%c0_8, %c0_9] : memref<256x256xbf16, #tpu.memory_space<vmem>>, vector<256x256xbf16>
    %cst_10 = arith.constant dense<0.000000e+00> : vector<2x256xf32>
    %13 = tpu.matmul %11, %12, %cst_10 {dimension_numbers = #tpu.dot_dimension_numbers<[1], [0], [0], [1], [0, 0, 1, 1], [], []>} : vector<2x256xbf16>, vector<256x256xbf16>, vector<2x256xf32> -> vector<2x256xf32>
    %c1 = arith.constant 1 : index
    %c0_11 = arith.constant 0 : index
    %14 = vector.load %arg6[%c1, %c0_11] : memref<8x256xf32, #tpu.memory_space<vmem>>, vector<1x256xf32>
    %15 = vector.broadcast %14 : vector<1x256xf32> to vector<2x256xf32>
    %16 = arith.addf %13, %15 : vector<2x256xf32>
    %17 = arith.negf %16 : vector<2x256xf32>
    %18 = math.exp %17 : vector<2x256xf32>
    %cst_12 = arith.constant 1.000000e+00 : f32
    %19 = vector.broadcast %cst_12 : f32 to vector<2x256xf32>
    %20 = arith.addf %19, %18 : vector<2x256xf32>
    %21 = arith.divf %19, %20 : vector<2x256xf32>
    %22 = vector.extract_strided_slice %21 {offsets = [0, 0], sizes = [2, 128], strides = [1, 1]} : vector<2x256xf32> to vector<2x128xf32>
    %23 = vector.extract_strided_slice %21 {offsets = [0, 128], sizes = [2, 128], strides = [1, 1]} : vector<2x256xf32> to vector<2x128xf32>
    %c0_13 = arith.constant 0 : index
    %c0_14 = arith.constant 0 : index
    %24 = vector.load %arg4[%c0_13, %c0_14] : memref<256x256xbf16, #tpu.memory_space<vmem>>, vector<256x256xbf16>
    %cst_15 = arith.constant dense<0.000000e+00> : vector<2x256xf32>
    %25 = tpu.matmul %11, %24, %cst_15 {dimension_numbers = #tpu.dot_dimension_numbers<[1], [0], [0], [1], [0, 0, 1, 1], [], []>} : vector<2x256xbf16>, vector<256x256xbf16>, vector<2x256xf32> -> vector<2x256xf32>
    %c2 = arith.constant 2 : index
    %c0_16 = arith.constant 0 : index
    %26 = vector.load %arg6[%c2, %c0_16] : memref<8x256xf32, #tpu.memory_space<vmem>>, vector<1x256xf32>
    %27 = vector.broadcast %26 : vector<1x256xf32> to vector<2x256xf32>
    %28 = arith.addf %25, %27 : vector<2x256xf32>
    %29 = vector.extract_strided_slice %28 {offsets = [0, 0], sizes = [2, 128], strides = [1, 1]} : vector<2x256xf32> to vector<2x128xf32>
    %30 = vector.extract_strided_slice %28 {offsets = [0, 128], sizes = [2, 128], strides = [1, 1]} : vector<2x256xf32> to vector<2x128xf32>
    %31 = arith.mulf %22, %30 : vector<2x128xf32>
    %32 = arith.addf %29, %31 : vector<2x128xf32>
    %33 = math.tanh %32 : vector<2x128xf32>
    %34 = arith.subf %1, %33 : vector<2x128xf32>
    %35 = arith.mulf %23, %34 : vector<2x128xf32>
    %36 = arith.addf %33, %35 : vector<2x128xf32>
    %37 = arith.truncf %36 : vector<2x128xf32> to vector<2x128xbf16>
    %c0_17 = arith.constant 0 : index
    %c0_18 = arith.constant 0 : index
    %38 = vector.load %arg5[%c0_17, %c0_18] : memref<128x128xbf16, #tpu.memory_space<vmem>>, vector<128x128xbf16>
    %cst_19 = arith.constant dense<0.000000e+00> : vector<2x128xf32>
    %39 = tpu.matmul %37, %38, %cst_19 {dimension_numbers = #tpu.dot_dimension_numbers<[1], [0], [0], [1], [0, 0, 1, 1], [], []>} : vector<2x128xbf16>, vector<128x128xbf16>, vector<2x128xf32> -> vector<2x128xf32>
    %c3 = arith.constant 3 : index
    %c0_20 = arith.constant 0 : index
    %40 = vector.load %arg6[%c3, %c0_20] : memref<8x256xf32, #tpu.memory_space<vmem>>, vector<1x128xf32>
    %41 = vector.broadcast %40 : vector<1x128xf32> to vector<2x128xf32>
    %42 = arith.addf %39, %41 : vector<2x128xf32>
    %cst_21 = arith.constant 0.000000e+00 : f32
    %43 = vector.broadcast %cst_21 : f32 to vector<2x128xf32>
    %44 = arith.maximumf %42, %43 : vector<2x128xf32>
    %c0_22 = arith.constant 0 : index
    %c0_23 = arith.constant 0 : index
    %45 = vector.load %arg7[%c0_22, %c0_23] : memref<2x128xf32, #tpu.memory_space<vmem>>, vector<2x128xf32>
    tpu.vector_store %arg7[%c0_22, %c0_23], %44 {strides = array<i32>} : memref<2x128xf32, #tpu.memory_space<vmem>>, vector<2x128xf32>,
    %c0_24 = arith.constant 0 : index
    %c0_25 = arith.constant 0 : index
    %46 = vector.load %arg8[%c0_24, %c0_25] : memref<2x128xf32, #tpu.memory_space<vmem>>, vector<2x128xf32>
    tpu.vector_store %arg8[%c0_24, %c0_25], %36 {strides = array<i32>} : memref<2x128xf32, #tpu.memory_space<vmem>>, vector<2x128xf32>,
    return
  }
}

</mosaic_0001>

<bundles_post_ra>
// kernel: forward.1
= control target key start
LH: loop header
LB: loop body
LE: loop exit
PB: predicated region body
PF: predicated region fallthrough
CT: control target
= control target key end

     0   :  { %14 = vsyncpa [#allocation3], 0  ;;  %s1280_s0 = inlined_call_operand.vmem [shape: f32[2,48], index: 0, kind: input, shape index: {}]   ;;  %s1281_s1 = inlined_call_operand.vmem [shape: f32[2,128], index: 1, kind: input, shape index: {}, may-alias: {1,8}]   ;;  %s1282_s2 = inlined_call_operand.vmem [shape: bf16[48,128], index: 2, kind: input, shape index: {}]   ;;  %s1283_s3 = inlined_call_operand.hbm [shape: bf16[256,256], index: 3, kind: input, shape index: {}]   ;;  %s1284_s4 = inlined_call_operand.hbm [shape: bf16[256,256], index: 4, kind: input, shape index: {}]   ;;  %s1285_s5 = inlined_call_operand.hbm [shape: bf16[128,128], index: 5, kind: input, shape index: {}]   ;;  %s1286_s6 = inlined_call_operand.hbm [shape: f32[8,256], index: 6, kind: input, shape index: {}]   ;;  %s1287_s7 = inlined_call_operand.vmem [shape: f32[2,128], index: 7, kind: output, shape index: {0}]   ;;  %s1288_s8 = inlined_call_operand.vmem [shape: f32[2,128], index: 8, kind: output, shape index: {1}, may-alias: {1,8}]  }
   0x1   :  { %15 = vsyncpa [#allocation5], 0 }
   0x2   :  { %16 = vsyncpa [#allocation8], 0  ;;  %s1129_s27 = smov [#allocation4]   ;;  %s1130_s29 = smov [#allocation2]  }
   0x3   :  { %s40_s28 = sshll.u32 %s1129_s27, 4  ;;  %s28_s30 = sshll.u32 %s1130_s29, 4  ;;  %s41_s28 = int_to_ptr.vmem [resolvable:$true] %s40_s28  ;;  %s1184_s30 = int_to_ptr.vmem [resolvable:$true] %s28_s30 }
   0x4   :  { %s1035_s11 = scalar_lea.hbm %s1284_s4, 4096 }
   0x5   :  { %p1036_p0 = scmp.ne.s32.totalorder %s1284_s4, %s1035_s11  ;;  %p1039_p1 = scmp.lt.u32.totalorder %s1035_s11, %s1284_s4 }
   0x7   :  { %p1041_p2 = pnand %p1039_p1, %p1036_p0 }
   0x9   :  { %1044 = shalt.err (!%p1041_p2)
}
   0xa   :  { %s1045_s16 = scalar_lea.vmem %s41_s28, 4096  ;;  %p1050_p4 = scmp.lt.s32.totalorder %s41_s28, %s41_s28 }
   0xb   :  { %p1046_p3 = scmp.ne.s32.totalorder %s41_s28, %s1045_s16  ;;  %p1051_p5 = scmp.lt.s32.totalorder %s1045_s16, %s1045_s16 }
   0xd   :  { %p1052_p6 = por %p1051_p5, %p1050_p4 }
   0xf   :  { %p1053_p7 = pnand %p1052_p6, %p1046_p3 }
  0x11   :  { %1056 = shalt.err (!%p1053_p7)
}
  0x12   :  { %s1131_s17 = smov 128   ;;  %s1132_s18 = smov 8  }
  0x13   :  { %46 = dma.hbm_to_vmem [thread:$0]  %s1284_s4, 4096, %s41_s28, [#allocation5], %s1131_s17, %s1131_s17, %s1132_s18  }
  0x14   :  { %s1057_s23 = scalar_lea.hbm %s1283_s3, 4096 }
  0x15   :  { %p1058_p8 = scmp.ne.s32.totalorder %s1283_s3, %s1057_s23  ;;  %p1061_p9 = scmp.lt.u32.totalorder %s1057_s23, %s1283_s3 }
  0x17   :  { %p1063_p10 = pnand %p1061_p9, %p1058_p8 }
  0x19   :  { %1066 = shalt.err (!%p1063_p10)
}
  0x1a   :  { %s1067_s29 = scalar_lea.vmem %s1184_s30, 4096  ;;  %p1072_p12 = scmp.lt.s32.totalorder %s1184_s30, %s1184_s30 }
  0x1b   :  { %p1068_p11 = scmp.ne.s32.totalorder %s1184_s30, %s1067_s29  ;;  %p1073_p13 = scmp.lt.s32.totalorder %s1067_s29, %s1067_s29 }
  0x1d   :  { %p1074_p0 = por %p1073_p13, %p1072_p12 }
  0x1f   :  { %p1075_p1 = pnand %p1074_p0, %p1068_p11 }
  0x21   :  { %1078 = shalt.err (!%p1075_p1)
}
  0x22   :  { %34 = dma.hbm_to_vmem [thread:$0]  %s1283_s3, 4096, %s1184_s30, [#allocation3], %s1131_s17, %s1131_s17, %s1132_s18  }
  0x23   :  { %s1133_s9 = smov [#allocation6]   ;;  %s1079_s13 = scalar_lea.hbm %s1285_s5, 1024 }
  0x24   :  { %s52_s10 = sshll.u32 %s1133_s9, 4  ;;  %p1080_p2 = scmp.ne.s32.totalorder %s1285_s5, %s1079_s13  ;;  %s53_s10 = int_to_ptr.vmem [resolvable:$true] %s52_s10 }
  0x25   :  { %p1083_p3 = scmp.lt.u32.totalorder %s1079_s13, %s1285_s5 }
  0x27   :  { %p1085_p4 = pnand %p1083_p3, %p1080_p2 }
  0x29   :  { %1088 = shalt.err (!%p1085_p4)
}
  0x2a   :  { %s1089_s20 = scalar_lea.vmem %s53_s10, 1024  ;;  %p1094_p6 = scmp.lt.s32.totalorder %s53_s10, %s53_s10 }
  0x2b   :  { %p1090_p5 = scmp.ne.s32.totalorder %s53_s10, %s1089_s20  ;;  %p1095_p7 = scmp.lt.s32.totalorder %s1089_s20, %s1089_s20 }
  0x2d   :  { %p1096_p8 = por %p1095_p7, %p1094_p6 }
  0x2f   :  { %p1097_p9 = pnand %p1096_p8, %p1090_p5 }
  0x31   :  { %1100 = shalt.err (!%p1097_p9)
}
  0x32   :  { %s1134_s3 = smov 64   ;;  %s1135_s30 = smov 4  }
  0x33   :  { %58 = dma.hbm_to_vmem [thread:$0]  %s1285_s5, 1024, %s53_s10, [#allocation5], %s1134_s3, %s1134_s3, %s1135_s30  }
  0x34   :  { %s1136_s21 = smov [#allocation7]   ;;  %s1101_s25 = scalar_lea.hbm %s1286_s6, 256 }
  0x35   :  { %s65_s22 = sshll.u32 %s1136_s21, 4  ;;  %p1102_p10 = scmp.ne.s32.totalorder %s1286_s6, %s1101_s25  ;;  %s66_s22 = int_to_ptr.vmem [resolvable:$true] %s65_s22 }
  0x36   :  { %p1105_p11 = scmp.lt.u32.totalorder %s1101_s25, %s1286_s6 }
  0x38   :  { %p1107_p12 = pnand %p1105_p11, %p1102_p10 }
  0x3a   :  { %1110 = shalt.err (!%p1107_p12)
}
  0x3b   :  { %s1111_s28 = scalar_lea.vmem %s66_s22, 256  ;;  %p1116_p0 = scmp.lt.s32.totalorder %s66_s22, %s66_s22 }
  0x3c   :  { %p1112_p13 = scmp.ne.s32.totalorder %s66_s22, %s1111_s28  ;;  %p1117_p1 = scmp.lt.s32.totalorder %s1111_s28, %s1111_s28 }
  0x3e   :  { %p1118_p2 = por %p1117_p1, %p1116_p0 }
  0x40   :  { %p1119_p3 = pnand %p1118_p2, %p1112_p13 }
  0x42   :  { %1122 = shalt.err (!%p1119_p3)
}
  0x43   :  { %68 = dma.hbm_to_vmem [thread:$0]  %s1286_s6, 256, %s66_s22, [#allocation8]  }
  0x44   :  { %1123 = dma.done.wait [#allocation3], 4096  }
  0x45   :  { %1124 = vsyncadd [#allocation3], 4294963200 }
  0x46   :  { %1125 = dma.done.wait [#allocation5], 5120  }
  0x47   :  { %1126 = vsyncadd [#allocation5], 4294962176 }
  0x48   :  { %1127 = dma.done.wait [#allocation8], 256  }
  0x49   :  { %1128 = vsyncadd [#allocation8], 4294967040  ;;  %v1137_v0 = vmov 0.0   ;;  %vm1138_vm0 = vmmov 0   ;;  %v918_v1 = vld [vmem:[%s1282_s2] sm:$0xff]   ;;  %v919_v2 = vld [vmem:[%s1282_s2 + $0x8] sm:$0xff]  }
  0x4a   :  { %878 = vmatprep.subr.bf16.mxu0 %v1137_v0  ;;  %884 = vmatprep.mubr.msk.bf16.mxu0 %vm1138_vm0, %v1137_v0  ;;  %v921_v3 = vld [vmem:[#allocation2 + $0x4] ss:$8 sps:$4 sm:$0xff]   ;;  %v920_v4 = vld [vmem:[%s1282_s2 + $0x10] sm:$0xff]   ;;  %v82_v5 = vld [vmem:[%s1280_s0] sm:$0x3]  ;;  %vm110_vm1 = vcmask 392192  }
  0x4b   :  { %879 = vmatpush3.bf16.msra.mxu0 %v918_v1  ;;  %v926_v6 = vld [vmem:[#allocation2] ss:$8 sps:$4 sm:$0xff]   ;;  %362 = vmatprep.subr.bf16.mxu1 %v921_v3  ;;  %v927_v7 = vld [vmem:[#allocation2 + $0x14] ss:$8 sps:$4 sm:$0xff]   ;;  %v925_v8 = vld [vmem:[#allocation4 + $0x4] ss:$8 sps:$4 sm:$0xff]   ;;  %v84_v10 = vpack.c.bf16 %v82_v5, %v82_v5 }
  0x4c   :  { %880 = vmatprep.subr.bf16.mxu0 %v1137_v0  ;;  %363 = vmatpush1.bf16.msra.mxu1 %v926_v6  ;;  %v932_v9 = vld [vmem:[#allocation2 + $0x10] ss:$8 sps:$4 sm:$0xff]   ;;  %v933_v11 = vld [vmem:[#allocation2 + $0x24] ss:$8 sps:$4 sm:$0xff]   ;;  %v923_v12 = vld [vmem:[#allocation4] ss:$8 sps:$4 sm:$0xff]  }
  0x4d   :  { %364 = vmatprep.subr.bf16.mxu1 %v927_v7  ;;  %v931_v13 = vld [vmem:[#allocation4 + $0x14] ss:$8 sps:$4 sm:$0xff]   ;;  %v938_v14 = vld [vmem:[#allocation2 + $0x20] ss:$8 sps:$4 sm:$0xff]   ;;  %v929_v16 = vld [vmem:[#allocation4 + $0x10] ss:$8 sps:$4 sm:$0xff]  }
  0x4e   :  { %v939_v15 = vld [vmem:[#allocation2 + $0x34] ss:$8 sps:$4 sm:$0xff]   ;;  %v937_v17 = vld [vmem:[#allocation4 + $0x24] ss:$8 sps:$4 sm:$0xff]   ;;  %v944_v18 = vld [vmem:[#allocation2 + $0x30] ss:$8 sps:$4 sm:$0xff]  }
  0x4f   :  { %881 = vmatpush3.bf16.msra.mxu0 %v919_v2  ;;  %v945_v19 = vld [vmem:[#allocation2 + $0x44] ss:$8 sps:$4 sm:$0xff]   ;;  %v935_v20 = vld [vmem:[#allocation4 + $0x20] ss:$8 sps:$4 sm:$0xff]   ;;  %v943_v21 = vld [vmem:[#allocation4 + $0x34] ss:$8 sps:$4 sm:$0xff]  }
  0x50   :  { %882 = vmatprep.subr.bf16.mxu0 %v1137_v0  ;;  %365 = vmatpush1.bf16.msra.mxu1 %v932_v9  ;;  %v950_v22 = vld [vmem:[#allocation2 + $0x40] ss:$8 sps:$4 sm:$0xff]   ;;  %v951_v23 = vld [vmem:[#allocation2 + $0x54] ss:$8 sps:$4 sm:$0xff]   ;;  %v941_v24 = vld [vmem:[#allocation4 + $0x30] ss:$8 sps:$4 sm:$0xff]  }
  0x51   :  { %366 = vmatprep.subr.bf16.mxu1 %v933_v11  ;;  %v949_v25 = vld [vmem:[#allocation4 + $0x44] ss:$8 sps:$4 sm:$0xff]   ;;  %v956_v26 = vld [vmem:[#allocation2 + $0x50] ss:$8 sps:$4 sm:$0xff]   ;;  %v947_v28 = vld [vmem:[#allocation4 + $0x40] ss:$8 sps:$4 sm:$0xff]  }
  0x52   :  { %v957_v27 = vld [vmem:[#allocation2 + $0x64] ss:$8 sps:$4 sm:$0xff]   ;;  %v955_v29 = vld [vmem:[#allocation4 + $0x54] ss:$8 sps:$4 sm:$0xff]   ;;  %v962_v30 = vld [vmem:[#allocation2 + $0x60] ss:$8 sps:$4 sm:$0xff]  }
  0x53   :  { %883 = vmatpush3.bf16.msra.mxu0 %v920_v4  ;;  %v963_v31 = vld [vmem:[#allocation2 + $0x74] ss:$8 sps:$4 sm:$0xff]   ;;  %v953_v32 = vld [vmem:[#allocation4 + $0x50] ss:$8 sps:$4 sm:$0xff]   ;;  %v961_v33 = vld [vmem:[#allocation4 + $0x64] ss:$8 sps:$4 sm:$0xff]  }
  0x54   :  { %620 = vmatprep.subr.bf16.mxu0 %v925_v8  ;;  %367 = vmatpush1.bf16.msra.mxu1 %v938_v14  ;;  %v968_v34 = vld [vmem:[#allocation2 + $0x70] ss:$8 sps:$4 sm:$0xff]   ;;  %v969_v35 = vld [vmem:[#allocation2 + $0x84] ss:$8 sps:$4 sm:$0xff]   ;;  %v959_v36 = vld [vmem:[#allocation4 + $0x60] ss:$8 sps:$4 sm:$0xff]  }
  0x55   :  { %368 = vmatprep.subr.bf16.mxu1 %v939_v15  ;;  %v967_v37 = vld [vmem:[#allocation4 + $0x74] ss:$8 sps:$4 sm:$0xff]   ;;  %v974_v38 = vld [vmem:[#allocation2 + $0x80] ss:$8 sps:$4 sm:$0xff]   ;;  %v965_v40 = vld [vmem:[#allocation4 + $0x70] ss:$8 sps:$4 sm:$0xff]  }
  0x56   :  { %885 = vmatmul.mubr.msk.bf16.vlgmr.msra.gmra.mrb[0].mxu0 %vm110_vm1, %v84_v10  ;;  %v975_v39 = vld [vmem:[#allocation2 + $0x94] ss:$8 sps:$4 sm:$0xff]   ;;  %v973_v41 = vld [vmem:[#allocation4 + $0x84] ss:$8 sps:$4 sm:$0xff]   ;;  %v980_v42 = vld [vmem:[#allocation2 + $0x90] ss:$8 sps:$4 sm:$0xff]  }
  0x57   :  { %621 = vmatpush1.bf16.msra.mxu0 %v923_v12  ;;  %v981_v43 = vld [vmem:[#allocation2 + $0xa4] ss:$8 sps:$4 sm:$0xff]   ;;  %v971_v44 = vld [vmem:[#allocation4 + $0x80] ss:$8 sps:$4 sm:$0xff]   ;;  %v979_v45 = vld [vmem:[#allocation4 + $0x94] ss:$8 sps:$4 sm:$0xff]  }
  0x58   :  { %622 = vmatprep.subr.bf16.mxu0 %v931_v13  ;;  %369 = vmatpush1.bf16.msra.mxu1 %v944_v18  ;;  %v986_v46 = vld [vmem:[#allocation2 + $0xa0] ss:$8 sps:$4 sm:$0xff]   ;;  %v987_v47 = vld [vmem:[#allocation2 + $0xb4] ss:$8 sps:$4 sm:$0xff]   ;;  %v977_v48 = vld [vmem:[#allocation4 + $0x90] ss:$8 sps:$4 sm:$0xff]  }
  0x59   :  { %370 = vmatprep.subr.bf16.mxu1 %v945_v19  ;;  %v985_v49 = vld [vmem:[#allocation4 + $0xa4] ss:$8 sps:$4 sm:$0xff]   ;;  %v992_v50 = vld [vmem:[#allocation2 + $0xb0] ss:$8 sps:$4 sm:$0xff]   ;;  %v983_v52 = vld [vmem:[#allocation4 + $0xa0] ss:$8 sps:$4 sm:$0xff]  }
  0x5a   :  { %v993_v51 = vld [vmem:[#allocation2 + $0xc4] ss:$8 sps:$4 sm:$0xff]   ;;  %v991_v53 = vld [vmem:[#allocation4 + $0xb4] ss:$8 sps:$4 sm:$0xff]   ;;  %v998_v54 = vld [vmem:[#allocation2 + $0xc0] ss:$8 sps:$4 sm:$0xff]  }
  0x5b   :  { %623 = vmatpush1.bf16.msra.mxu0 %v929_v16  ;;  %v999_v55 = vld [vmem:[#allocation2 + $0xd4] ss:$8 sps:$4 sm:$0xff]   ;;  %v989_v56 = vld [vmem:[#allocation4 + $0xb0] ss:$8 sps:$4 sm:$0xff]   ;;  %v997_v57 = vld [vmem:[#allocation4 + $0xc4] ss:$8 sps:$4 sm:$0xff]  }
  0x5c   :  { %624 = vmatprep.subr.bf16.mxu0 %v937_v17  ;;  %371 = vmatpush1.bf16.msra.mxu1 %v950_v22  ;;  %v1004_v58 = vld [vmem:[#allocation2 + $0xd0] ss:$8 sps:$4 sm:$0xff]   ;;  %v1005_v59 = vld [vmem:[#allocation2 + $0xe4] ss:$8 sps:$4 sm:$0xff]   ;;  %v995_v60 = vld [vmem:[#allocation4 + $0xc0] ss:$8 sps:$4 sm:$0xff]  }
  0x5d   :  { %372 = vmatprep.subr.bf16.mxu1 %v951_v23  ;;  %v1003_v61 = vld [vmem:[#allocation4 + $0xd4] ss:$8 sps:$4 sm:$0xff]   ;;  %v1001_v62 = vld [vmem:[#allocation4 + $0xd0] ss:$8 sps:$4 sm:$0xff]   ;;  %v1009_v63 = vld [vmem:[#allocation4 + $0xe4] ss:$8 sps:$4 sm:$0xff]  }
  0x5e   :  { %v1007_v1 = vld [vmem:[#allocation4 + $0xe0] ss:$8 sps:$4 sm:$0xff]   ;;  %v1011_v3 = vld [vmem:[#allocation2 + $0xf4] ss:$8 sps:$4 sm:$0xff]   ;;  %v1013_v5 = vld [vmem:[#allocation4 + $0xf0] ss:$8 sps:$4 sm:$0xff]  }
  0x5f   :  { %625 = vmatpush1.bf16.msra.mxu0 %v935_v20  ;;  %v1010_v2 = vld [vmem:[#allocation2 + $0xe0] ss:$8 sps:$4 sm:$0xff]   ;;  %v1015_v4 = vld [vmem:[#allocation4 + $0xf4] ss:$8 sps:$4 sm:$0xff]   ;;  %v1016_v6 = vld [vmem:[#allocation2 + $0xf0] ss:$8 sps:$4 sm:$0xff]  }
  0x60   :  { %626 = vmatprep.subr.bf16.mxu0 %v943_v21  ;;  %373 = vmatpush1.bf16.msra.mxu1 %v956_v26  ;;  %v1259_v7 = vld [vmem:[%s1281_s1] sm:$0x3]  ;;  %v1018_v18 = vld [vmem:[#allocation6 + $0x8] sm:$0xff]   ;;  %v1019_v19 = vld [vmem:[#allocation6 + $0x10] sm:$0xff]  }
  0x61   :  { %374 = vmatprep.subr.bf16.mxu1 %v957_v27  ;;  %v156_v8 = vpack.c.bf16 %v1259_v7, %v1259_v7  ;;  %v91_v9 = vld [vmem:[#allocation7] ss:$0 sm:$0xff]  ;;  %v1020_v20 = vld [vmem:[#allocation6 + $0x18] sm:$0xff]   ;;  %v1022_v22 = vld [vmem:[#allocation6 + $0x28] sm:$0xff]  }
  0x62   :  { %v1017_v17 = vld [vmem:[#allocation6] sm:$0xff]   ;;  %v1023_v23 = vld [vmem:[#allocation6 + $0x30] sm:$0xff]  }
  0x63   :  { %627 = vmatpush1.bf16.msra.mxu0 %v941_v24  ;;  %394 = vmatprep.mubr.bf16.mxu1 %v156_v8  ;;  %v1021_v21 = vld [vmem:[#allocation6 + $0x20] sm:$0xff]   ;;  %v1024_v24 = vld [vmem:[#allocation6 + $0x38] sm:$0xff]  }
  0x64   :  { %628 = vmatprep.subr.bf16.mxu0 %v949_v25  ;;  %375 = vmatpush1.bf16.msra.mxu1 %v962_v30  ;;  %v192_v25 = vlaneseq }
  0x65   :  { %376 = vmatprep.subr.bf16.mxu1 %v963_v31  ;;  %652 = vmatprep.mubr.bf16.mxu0 %v156_v8 }
  0x66   :  { %v193_v26 = vshrl.u32 %v192_v25, 7 }
  0x67   :  { %629 = vmatpush1.bf16.msra.mxu0 %v947_v28  ;;  %v190_v28 = vld [vmem:[#allocation7 + $0x1] ss:$8 sm:$0x3] }
  0x68   :  { %630 = vmatprep.subr.bf16.mxu0 %v955_v29  ;;  %377 = vmatpush1.bf16.msra.mxu1 %v968_v34  ;;  %v194_v27 = vsub.s32 0, %v193_v26 }
  0x69   :  { %378 = vmatprep.subr.bf16.mxu1 %v969_v35 }
  0x6a   :  { %v195_v29 = vrot.slane %v190_v28, %v194_v27 }
  0x6b   :  { %631 = vmatpush1.bf16.msra.mxu0 %v953_v32 }
  0x6c   :  { %632 = vmatprep.subr.bf16.mxu0 %v961_v33  ;;  %379 = vmatpush1.bf16.msra.mxu1 %v974_v38  ;;  %v198_v33 = vsub.s32 1, %v193_v26 }
  0x6d   :  { %380 = vmatprep.subr.bf16.mxu1 %v975_v39 }
  0x6f   :  { %633 = vmatpush1.bf16.msra.mxu0 %v959_v36 }
  0x70   :  { %634 = vmatprep.subr.bf16.mxu0 %v967_v37  ;;  %381 = vmatpush1.bf16.msra.mxu1 %v980_v42 }
  0x71   :  { %382 = vmatprep.subr.bf16.mxu1 %v981_v43 }
  0x73   :  { %635 = vmatpush1.bf16.msra.mxu0 %v965_v40 }
  0x74   :  { %636 = vmatprep.subr.bf16.mxu0 %v973_v41  ;;  %383 = vmatpush1.bf16.msra.mxu1 %v986_v46  ;;  %v199_v41 = vrot.slane %v190_v28, %v198_v33 }
  0x75   :  { %384 = vmatprep.subr.bf16.mxu1 %v987_v47 }
  0x77   :  { %637 = vmatpush1.bf16.msra.mxu0 %v971_v44 }
  0x78   :  { %638 = vmatprep.subr.bf16.mxu0 %v979_v45  ;;  %385 = vmatpush1.bf16.msra.mxu1 %v992_v50  ;;  %v448_v45 = vld [vmem:[#allocation7 + $0x2] ss:$8 sm:$0x3] }
  0x79   :  { %386 = vmatprep.subr.bf16.mxu1 %v993_v51  ;;  %v457_v46 = vrot.slane %v448_v45, %v198_v33  ;;  %v453_v47 = vrot.slane %v448_v45, %v194_v27 }
  0x7b   :  { %639 = vmatpush1.bf16.msra.mxu0 %v977_v48 }
  0x7c   :  { %640 = vmatprep.subr.bf16.mxu0 %v985_v49  ;;  %387 = vmatpush1.bf16.msra.mxu1 %v998_v54 }
  0x7d   :  { %388 = vmatprep.subr.bf16.mxu1 %v999_v55 }
  0x7f   :  { %641 = vmatpush1.bf16.msra.mxu0 %v983_v52 }
  0x80   :  { %642 = vmatprep.subr.bf16.mxu0 %v991_v53  ;;  %389 = vmatpush1.bf16.msra.mxu1 %v1004_v58 }
  0x81   :  { %390 = vmatprep.subr.bf16.mxu1 %v1005_v59 }
  0x83   :  { %643 = vmatpush1.bf16.msra.mxu0 %v989_v56 }
  0x84   :  { %644 = vmatprep.subr.bf16.mxu0 %v997_v57  ;;  %391 = vmatpush1.bf16.msra.mxu1 %v1010_v2 }
  0x85   :  { %392 = vmatprep.subr.bf16.mxu1 %v1011_v3 }
  0x87   :  { %645 = vmatpush1.bf16.msra.mxu0 %v995_v60 }
  0x88   :  { %646 = vmatprep.subr.bf16.mxu0 %v1003_v61  ;;  %393 = vmatpush1.bf16.msra.mxu1 %v1016_v6  ;;  %v684_v61 = vld [vmem:[#allocation7 + $0x3] ss:$0 sm:$0xff] }
  0x89   :  { %888 = vmatprep.subr.bf16.mxu1 %v1137_v0 }
  0x8b   :  { %647 = vmatpush1.bf16.msra.mxu0 %v1001_v62 }
  0x8c   :  { %648 = vmatprep.subr.bf16.mxu0 %v1009_v63 }
  0x8f   :  { %649 = vmatpush1.bf16.msra.mxu0 %v1007_v1 }
  0x90   :  { %650 = vmatprep.subr.bf16.mxu0 %v1015_v4 }
  0x93   :  { %651 = vmatpush1.bf16.msra.mxu0 %v1013_v5 }
 0x129   :  { %v148_v10 = vpop.f32.mrb[0].mxu0 }
 0x12a   :  { %v149_v11 = vadd.f32 %v148_v10, %v91_v9  ;;  %v886_v12 = vpop.f32.mrb[1].mxu0 }
 0x12b   :  { %v151_v13 = vpop.f32.mrb[2].mxu0 }
 0x12c   :  { %v154_v14 = vmax.f32 %v149_v11, 0.0  ;;  %v887_v15 = vpop.f32.mrb[3].mxu0 }
 0x12e   :  { %v155_v16 = vpack.c.bf16 %v154_v14, %v154_v14 }
 0x130   :  { %395 = vmatmul.mubr.bf16.vlgmr.msra.gmra.mrb[0].mxu1 %v155_v16  ;;  %653 = vmatmul.mubr.bf16.vlgmr.msra.gmra.mrb[4].mxu0 %v155_v16 }
 0x131   :  { %904 = vmatprep.mubr.msk.bf16.mxu1 %vm1138_vm0, %v1137_v0  ;;  %889 = vmatpush3.bf16.msra.mxu1 %v1017_v17 }
 0x132   :  { %890 = vmatprep.subr.bf16.mxu1 %v1137_v0 }
 0x135   :  { %891 = vmatpush3.bf16.msra.mxu1 %v1018_v18 }
 0x136   :  { %892 = vmatprep.subr.bf16.mxu1 %v1137_v0 }
 0x139   :  { %893 = vmatpush3.bf16.msra.mxu1 %v1019_v19 }
 0x13a   :  { %894 = vmatprep.subr.bf16.mxu1 %v1137_v0 }
 0x13d   :  { %895 = vmatpush3.bf16.msra.mxu1 %v1020_v20 }
 0x13e   :  { %896 = vmatprep.subr.bf16.mxu1 %v1137_v0 }
 0x141   :  { %897 = vmatpush3.bf16.msra.mxu1 %v1021_v21 }
 0x142   :  { %898 = vmatprep.subr.bf16.mxu1 %v1137_v0 }
 0x145   :  { %899 = vmatpush3.bf16.msra.mxu1 %v1022_v22 }
 0x146   :  { %900 = vmatprep.subr.bf16.mxu1 %v1137_v0 }
 0x149   :  { %901 = vmatpush3.bf16.msra.mxu1 %v1023_v23 }
 0x14a   :  { %902 = vmatprep.subr.bf16.mxu1 %v1137_v0 }
 0x14d   :  { %903 = vmatpush3.bf16.msra.mxu1 %v1024_v24 }
 0x203   :  { %v396_v30 = vpop.f32.mrb[0].mxu1  ;;  %v654_v31 = vpop.f32.mrb[4].mxu0 }
 0x204   :  { %v397_v32 = vadd.f32 %v396_v30, %v195_v29  ;;  %v398_v34 = vpop.f32.mrb[1].mxu1  ;;  %v656_v35 = vpop.f32.mrb[5].mxu0  ;;  %v655_v51 = vadd.f32 %v654_v31, %v453_v47 }
 0x205   :  { %v400_v36 = vpop.f32.mrb[2].mxu1  ;;  %v658_v37 = vpop.f32.mrb[6].mxu0  ;;  %v399_v0 = vadd.f32 %v398_v34, %v199_v41  ;;  %v657_v49 = vadd.f32 %v656_v35, %v457_v46 }
 0x206   :  { %v823_v38 = vmul.f32 -1.442695, %v397_v32  ;;  %v401_v39 = vpop.f32.mrb[3].mxu1  ;;  %v659_v40 = vpop.f32.mrb[7].mxu0 }
 0x207   :  { %v824_v42 = vmul.f32 -1.442695, %v399_v0 }
 0x208   :  { %1025 = vpow2.f32 %v823_v38 }
 0x209   :  { %1027 = vpow2.f32 %v824_v42 }
 0x212   :  { %v1026_v43 = vpop.eup %1025 }
 0x213   :  { %v409_v44 = vadd.f32 1.0, %v1026_v43  ;;  %v1028_v48 = vpop.eup %1027 }
 0x214   :  { %v410_v53 = vadd.f32 1.0, %v1028_v48 }
 0x215   :  { %1029 = vrcp.f32 %v409_v44 }
 0x21f   :  { %v1030_v50 = vpop.eup %1029 }
 0x220   :  { %v661_v52 = vmul.f32 %v1030_v50, %v657_v49 }
 0x222   :  { %v662_v54 = vadd.f32 %v661_v52, %v655_v51 }
 0x224   :  { %1031 = vtanh.f32 %v662_v54 }
 0x225   :  { %1033 = vrcp.f32 %v410_v53 }
 0x22e   :  { %v1032_v55 = vpop.eup %1031 }
 0x22f   :  { %v664_v56 = vsub.f32 %v1259_v7, %v1032_v55  ;;  %v1034_v57 = vpop.eup %1033 }
 0x231   :  { %v665_v58 = vmul.f32 %v1034_v57, %v664_v56 }
 0x233   :  { %v666_v59 = vadd.f32 %v1032_v55, %v665_v58 }
 0x235   :  { %v667_v60 = vpack.c.bf16 %v666_v59, %v666_v59  ;;  %775 = vst [vmem:[%s1288_s8] sm:$0x3] %v666_v59 }
 0x237   :  { %905 = vmatmul.mubr.bf16.vlgmr.msra.gmra.mrb[4].mxu1 %v667_v60 }
 0x30a   :  { %v767_v62 = vpop.f32.mrb[4].mxu1 }
 0x30b   :  { %v768_v63 = vadd.f32 %v767_v62, %v684_v61  ;;  %v906_v1 = vpop.f32.mrb[5].mxu1 }
 0x30c   :  { %v770_v2 = vpop.f32.mrb[6].mxu1 }
 0x30d   :  { %v773_v3 = vmax.f32 %v768_v63, 0.0  ;;  %v907_v4 = vpop.f32.mrb[7].mxu1 }
 0x30f   :  { %774 = vst [vmem:[%s1287_s7] sm:$0x3] %v773_v3 }
 0x310   :  { %784 = vsyncpa [#allocation3], 1 }
 0x311   :  { %785 = vsyncpa [#allocation5], 1 }
 0x312   :  { %786 = vsyncpa [#allocation8], 1 }

</bundles_post_ra>
